<compile_context>
chip_gen: v7x
topology: tpu7x:2x2x1
jax: 0.10.0
libtpu: 0.0.40
codegen_flags: <defaults>
</compile_context>

<pallas_src>
import functools
import math

import jax
import jax.numpy as jnp
from jax.experimental import pallas as pl
from jax.experimental.pallas import tpu as pltpu


def _round_up(x: int, m: int) -> int:
    return ((x + m - 1) // m) * m


def _pick_tile(aligned: int, cap: int) -> int:
    """Largest multiple of 128 that is <= min(cap, aligned) and divides `aligned`."""
    d = max(128, (min(cap, aligned) // 128) * 128)
    while aligned % d:
        d -= 128
    return d


def _prep(x, rows: int, cols: int, matmul_dtype):
    """Pad to (rows, cols) only if needed. Unpadded arrays are passed through
    untouched (f32) and cast per-tile in the kernel -> no extra HBM copy."""
    r, c = x.shape
    if (r, c) == (rows, cols):
        return x
    return jnp.pad(x, ((0, rows - r), (0, cols - c))).astype(matmul_dtype)


# ---------------------------------------------------------------------------
# Fast path: whole problem in VMEM, both matmuls fused in one kernel.
# ---------------------------------------------------------------------------
def _fused_small_kernel(feat_ref, wt_ref, adj_ref, out_ref, *, active, matmul_dtype):
    s = jnp.dot(
        feat_ref[...].astype(matmul_dtype),
        wt_ref[...].astype(matmul_dtype),
        preferred_element_type=jnp.float32,
    )
    if active:
        s = jnp.tanh(s)  # tanh on the f32 accumulation (EUP)
    out_ref[...] = jnp.dot(
        adj_ref[...].astype(matmul_dtype),
        s.astype(matmul_dtype),
        preferred_element_type=jnp.float32,
    ).astype(out_ref.dtype)


# ---------------------------------------------------------------------------
# Stage 1: support = (tanh)(features @ w.T), tiled over (rows, cols, f_in).
# feat_ref: (tm, fk)   wt_ref: (fk, tn)   sup_ref: (tm, tn)   acc_ref: f32 (tm, tn)
# ---------------------------------------------------------------------------
def _support_kernel(feat_ref, wt_ref, sup_ref, acc_ref, *, active, matmul_dtype):
    @pl.when(pl.program_id(2) == 0)
    def _():
        acc_ref[...] = jnp.zeros_like(acc_ref)

    acc_ref[...] += jnp.dot(
        feat_ref[...].astype(matmul_dtype),
        wt_ref[...].astype(matmul_dtype),
        preferred_element_type=jnp.float32,
    )

    @pl.when(pl.program_id(2) == pl.num_programs(2) - 1)
    def _():
        s = acc_ref[...]
        if active:
            s = jnp.tanh(s)  # applied to the full-K f32 sum (no partial tanh)
        sup_ref[...] = s.astype(sup_ref.dtype)


# ---------------------------------------------------------------------------
# Stage 2: output = adj @ support. Accumulates directly into the resident f32
# output block (same block index across the arbitrary k axis) -> no scratch.
# adj_ref: (tm, tk)   sup_ref: (tk, tn)   out_ref: (tm, tn) f32
# ---------------------------------------------------------------------------
def _adj_matmul_kernel(adj_ref, sup_ref, out_ref, *, matmul_dtype):
    @pl.when(pl.program_id(2) == 0)
    def _():
        out_ref[...] = jnp.zeros_like(out_ref)

    out_ref[...] += jnp.dot(
        adj_ref[...].astype(matmul_dtype),
        sup_ref[...].astype(matmul_dtype),
        preferred_element_type=jnp.float32,
    )


def gnn_layer_forward(
    features,
    adj,
    w,
    active: bool = True,
    *,
    matmul_dtype=jnp.bfloat16,  # MXU operand dtype; accumulation is always f32
):
    """Pallas implementation of GNNLayer.forward.

    features: (N, in_features) f32
    adj:      (N, N) f32
    w:        (out_features, in_features) f32   (PyTorch F.linear convention)
    returns:  (N, out_features) with features.dtype
    """
    n, f_in = features.shape
    f_out, f_in_w = w.shape
    assert f_in_w == f_in
    assert adj.shape == (n, n)
    out_dtype = features.dtype
    op_isz = jnp.dtype(matmul_dtype).itemsize

    wt = w.T  # (f_in, f_out): pre-transposed once in the wrapper, never in-kernel

    n_al = _round_up(n, 128)
    f_in_al = _round_up(f_in, 128)
    f_out_al = _round_up(f_out, 128)

    # ---- small-problem fast path: fused kernel, everything resident in VMEM ----
    fast_vmem = 4 * (n_al * n_al + n_al * f_in_al + f_in_al * f_out_al + 2 * n_al * f_out_al)
    if n_al <= 1024 and f_out_al <= 512 and fast_vmem <= 8 * 1024 * 1024:
        feat_p = _prep(features, n_al, f_in_al, matmul_dtype)
        wt_p = _prep(wt, f_in_al, f_out_al, matmul_dtype)
        adj_p = _prep(adj, n_al, n_al, matmul_dtype)
        out_p = pl.pallas_call(
            functools.partial(
                _fused_small_kernel, active=active, matmul_dtype=matmul_dtype
            ),
            out_shape=jax.ShapeDtypeStruct((n_al, f_out_al), jnp.float32),
            in_specs=[pl.BlockSpec(memory_space=pltpu.MemorySpace.VMEM)] * 3,
            out_specs=pl.BlockSpec(memory_space=pltpu.MemorySpace.VMEM),
            cost_estimate=pl.CostEstimate(
                flops=2 * n_al * f_in_al * f_out_al + 2 * n_al * n_al * f_out_al,
                transcendentals=(n_al * f_out_al) if active else 0,
                bytes_accessed=fast_vmem,
            ),
        )(feat_p, wt_p, adj_p)
        return out_p[:n, :f_out].astype(out_dtype)

    # ---- tiled path -----------------------------------------------------------
    # tm/tk divide n_al exactly (no lcm padding blowup: <=127 padded rows total).
    tm = _pick_tile(n_al, 512)
    tk = tm
    if tm * 2 <= 1024 and (n_al // tm) % 2 == 0:
        tk = tm * 2
    fk = _pick_tile(f_in_al, 1024)

    if f_out_al <= 512:
        tn = f_out_al          # single j block: adj streams once, w.T stays resident
        f_out_pad = f_out_al
    else:
        tn = 512
        f_out_pad = _round_up(f_out_al, tn)

    feat_p = _prep(features, n_al, f_in_al, matmul_dtype)
    wt_p = _prep(wt, f_in_al, f_out_pad, matmul_dtype)
    adj_p = _prep(adj, n_al, n_al, matmul_dtype)

    # ---- Stage 1: support = (tanh)(features @ w.T) -----------------------------
    support = pl.pallas_call(
        functools.partial(_support_kernel, active=active, matmul_dtype=matmul_dtype),
        out_shape=jax.ShapeDtypeStruct((n_al, f_out_pad), matmul_dtype),
        grid_spec=pltpu.PrefetchScalarGridSpec(
            num_scalar_prefetch=0,
            grid=(n_al // tm, f_out_pad // tn, f_in_al // fk),
            in_specs=[
                pl.BlockSpec((tm, fk), lambda i, j, k: (i, k)),
                pl.BlockSpec((fk, tn), lambda i, j, k: (k, j)),
            ],
            out_specs=pl.BlockSpec((tm, tn), lambda i, j, k: (i, j)),
            scratch_shapes=[pltpu.VMEM((tm, tn), jnp.float32)],
        ),
        compiler_params=pltpu.CompilerParams(
            dimension_semantics=("parallel", "parallel", "arbitrary"),
            vmem_limit_bytes=32 * 1024 * 1024,
        ),
        cost_estimate=pl.CostEstimate(
            flops=2 * n_al * f_in_al * f_out_pad,
            transcendentals=(n_al * f_out_pad) if active else 0,
            bytes_accessed=n_al * f_in_al * feat_p.dtype.itemsize
            + f_in_al * f_out_pad * wt_p.dtype.itemsize
            + n_al * f_out_pad * op_isz,
        ),
    )(feat_p, wt_p)

    # ---- Stage 2: output = adj @ support ---------------------------------------
    out_p = pl.pallas_call(
        functools.partial(_adj_matmul_kernel, matmul_dtype=matmul_dtype),
        out_shape=jax.ShapeDtypeStruct((n_al, f_out_pad), jnp.float32),
        grid_spec=pltpu.PrefetchScalarGridSpec(
            num_scalar_prefetch=0,
            grid=(n_al // tm, f_out_pad // tn, n_al // tk),
            in_specs=[
                pl.BlockSpec((tm, tk), lambda i, j, k: (i, k)),
                pl.BlockSpec((tk, tn), lambda i, j, k: (k, j)),
            ],
            out_specs=pl.BlockSpec((tm, tn), lambda i, j, k: (i, j)),
        ),
        compiler_params=pltpu.CompilerParams(
            dimension_semantics=("parallel", "parallel", "arbitrary"),
            vmem_limit_bytes=32 * 1024 * 1024,
        ),
        cost_estimate=pl.CostEstimate(
            flops=2 * n_al * n_al * f_out_pad,
            transcendentals=0,
            bytes_accessed=n_al * n_al * adj_p.dtype.itemsize
            + n_al * f_out_pad * op_isz
            + n_al * f_out_pad * 4,
        ),
    )(adj_p, support)

    return out_p[:n, :f_out].astype(out_dtype)


def _xavier_uniform(key, shape, dtype=jnp.float32):
    # torch.nn.init.xavier_uniform_ for a (fan_out, fan_in) weight
    fan_out, fan_in = shape
    bound = math.sqrt(6.0 / (fan_in + fan_out))
    return jax.random.uniform(key, shape, dtype, minval=-bound, maxval=bound)


def _make_inputs(key, n, f_in, f_out):
    k_feat, k_adj, k_w = jax.random.split(key, 3)
    features = jax.random.normal(k_feat, (n, f_in), dtype=jnp.float32)
    adj_raw = jax.random.uniform(k_adj, (n, n), dtype=jnp.float32)
    adj = adj_raw / jnp.sum(adj_raw, axis=-1, keepdims=True)
    w = _xavier_uniform(k_w, (f_out, f_in))
    return features, adj, w


if __name__ == "__main__":
    key = jax.random.PRNGKey(0)
    k_small, k_big = jax.random.split(key)

    # --- small problem (exercises the fused fast path) ---
    N, IN_FEATURES, OUT_FEATURES = 16, 32, 16
    features, adj, w = _make_inputs(k_small, N, IN_FEATURES, OUT_FEATURES)

    out = jax.block_until_ready(gnn_layer_forward(features, adj, w, active=True))
    out_ref = adj @ jnp.tanh(features @ w.T)
    assert out.shape == (N, OUT_FEATURES)
    assert jnp.allclose(out, out_ref, atol=2e-2, rtol=2e-2)

    out_na = jax.block_until_ready(gnn_layer_forward(features, adj, w, active=False))
    out_na_ref = adj @ (features @ w.T)
    assert jnp.allclose(out_na, out_na_ref, atol=2e-2, rtol=2e-2)

    # --- larger, unaligned problem (exercises the tiled two-stage path) ---
    N2, IN2, OUT2 = 1160, 200, 96
    features2, adj2, w2 = _make_inputs(k_big, N2, IN2, OUT2)

    out2 = jax.block_until_ready(gnn_layer_forward(features2, adj2, w2, active=True))
    out2_ref = adj2 @ jnp.tanh(features2 @ w2.T)
    assert out2.shape == (N2, OUT2)
    assert jnp.allclose(out2, out2_ref, atol=2e-2, rtol=2e-2)

    print("KERNEL_OK")
</pallas_src>

<mosaic_0001>
module attributes {stable_mosaic.version = 11 : i64} {
  func.func @_fused_small_kernel(%arg0: memref<128x128xbf16, #tpu.memory_space<vmem>>, %arg1: memref<128x128xbf16, #tpu.memory_space<vmem>>, %arg2: memref<128x128xbf16, #tpu.memory_space<vmem>>, %arg3: memref<128x128xf32, #tpu.memory_space<vmem>>) attributes {dimension_semantics = [], scalar_prefetch = 0 : i64, scratch_operands = 0 : i64, tpu.core_type = #tpu.core_type<tc>} {
    %c0 = arith.constant 0 : index
    %c0_0 = arith.constant 0 : index
    %0 = vector.load %arg0[%c0, %c0_0] : memref<128x128xbf16, #tpu.memory_space<vmem>>, vector<128x128xbf16>
    %c0_1 = arith.constant 0 : index
    %c0_2 = arith.constant 0 : index
    %1 = vector.load %arg1[%c0_1, %c0_2] : memref<128x128xbf16, #tpu.memory_space<vmem>>, vector<128x128xbf16>
    %cst = arith.constant dense<0.000000e+00> : vector<128x128xf32>
    %2 = tpu.matmul %0, %1, %cst {dimension_numbers = #tpu.dot_dimension_numbers<[1], [0], [0], [1], [0, 0, 1, 1], [], []>} : vector<128x128xbf16>, vector<128x128xbf16>, vector<128x128xf32> -> vector<128x128xf32>
    %3 = math.tanh %2 : vector<128x128xf32>
    %c0_3 = arith.constant 0 : index
    %c0_4 = arith.constant 0 : index
    %4 = vector.load %arg2[%c0_3, %c0_4] : memref<128x128xbf16, #tpu.memory_space<vmem>>, vector<128x128xbf16>
    %5 = arith.truncf %3 : vector<128x128xf32> to vector<128x128xbf16>
    %cst_5 = arith.constant dense<0.000000e+00> : vector<128x128xf32>
    %6 = tpu.matmul %4, %5, %cst_5 {dimension_numbers = #tpu.dot_dimension_numbers<[1], [0], [0], [1], [0, 0, 1, 1], [], []>} : vector<128x128xbf16>, vector<128x128xbf16>, vector<128x128xf32> -> vector<128x128xf32>
    %c0_6 = arith.constant 0 : index
    %c0_7 = arith.constant 0 : index
    %7 = vector.load %arg3[%c0_6, %c0_7] : memref<128x128xf32, #tpu.memory_space<vmem>>, vector<128x128xf32>
    tpu.vector_store %arg3[%c0_6, %c0_7], %6 {strides = array<i32>} : memref<128x128xf32, #tpu.memory_space<vmem>>, vector<128x128xf32>,
    return
  }
}

</mosaic_0001>

<bundles_post_ra>
// kernel: tpu_custom_call.1
= control target key start
LH: loop header
LB: loop body
LE: loop exit
PB: predicated region body
PF: predicated region fallthrough
CT: control target
= control target key end

     0   :  { %8 = vsyncpa [#allocation3], 0  ;;  %s871_s0 = inlined_call_operand.hbm [shape: bf16[128,128], index: 0, kind: input, shape index: {}]   ;;  %s872_s1 = inlined_call_operand.hbm [shape: bf16[128,128], index: 1, kind: input, shape index: {}]   ;;  %s873_s2 = inlined_call_operand.hbm [shape: bf16[128,128], index: 2, kind: input, shape index: {}]   ;;  %s874_s3 = inlined_call_operand.hbm [shape: f32[128,128], index: 3, kind: output, shape index: {}]  }
   0x1   :  { %9 = vsyncpa [#allocation6], 0 }
   0x2   :  { %10 = vsyncpa [#allocation4], 0  ;;  %s779_s12 = smov [#allocation5]   ;;  %s780_s14 = smov [#allocation2]  }
   0x3   :  { %s28_s13 = sshll.u32 %s779_s12, 4  ;;  %s16_s15 = sshll.u32 %s780_s14, 4  ;;  %s29_s13 = int_to_ptr.vmem [resolvable:$true] %s28_s13  ;;  %s807_s15 = int_to_ptr.vmem [resolvable:$true] %s16_s15 }
   0x4   :  { %s685_s18 = scalar_lea.hbm %s872_s1, 1024 }
   0x5   :  { %p686_p0 = scmp.ne.s32.totalorder %s872_s1, %s685_s18  ;;  %p689_p1 = scmp.lt.u32.totalorder %s685_s18, %s872_s1 }
   0x7   :  { %p691_p2 = pnand %p689_p1, %p686_p0 }
   0x9   :  { %694 = shalt.err (!%p691_p2)
}
   0xa   :  { %s695_s23 = scalar_lea.vmem %s29_s13, 1024  ;;  %p700_p4 = scmp.lt.s32.totalorder %s29_s13, %s29_s13 }
   0xb   :  { %p696_p3 = scmp.ne.s32.totalorder %s29_s13, %s695_s23  ;;  %p701_p5 = scmp.lt.s32.totalorder %s695_s23, %s695_s23 }
   0xd   :  { %p702_p6 = por %p701_p5, %p700_p4 }
   0xf   :  { %p703_p7 = pnand %p702_p6, %p696_p3 }
  0x11   :  { %706 = shalt.err (!%p703_p7)
}
  0x12   :  { %s781_s24 = smov 64   ;;  %s782_s25 = smov 4  }
  0x13   :  { %34 = dma.hbm_to_vmem [thread:$0]  %s872_s1, 1024, %s29_s13, [#allocation6], %s781_s24, %s781_s24, %s782_s25  }
  0x14   :  { %s707_s30 = scalar_lea.hbm %s871_s0, 1024 }
  0x15   :  { %p708_p8 = scmp.ne.s32.totalorder %s871_s0, %s707_s30  ;;  %p711_p9 = scmp.lt.u32.totalorder %s707_s30, %s871_s0 }
  0x17   :  { %p713_p10 = pnand %p711_p9, %p708_p8 }
  0x19   :  { %716 = shalt.err (!%p713_p10)
}
  0x1a   :  { %s717_s8 = scalar_lea.vmem %s807_s15, 1024  ;;  %p722_p12 = scmp.lt.s32.totalorder %s807_s15, %s807_s15 }
  0x1b   :  { %p718_p11 = scmp.ne.s32.totalorder %s807_s15, %s717_s8  ;;  %p723_p13 = scmp.lt.s32.totalorder %s717_s8, %s717_s8 }
  0x1d   :  { %p724_p0 = por %p723_p13, %p722_p12 }
  0x1f   :  { %p725_p1 = pnand %p724_p0, %p718_p11 }
  0x21   :  { %728 = shalt.err (!%p725_p1)
}
  0x22   :  { %22 = dma.hbm_to_vmem [thread:$0]  %s871_s0, 1024, %s807_s15, [#allocation3], %s781_s24, %s781_s24, %s782_s25  }
  0x23   :  { %s783_s10 = smov [#allocation7]   ;;  %s729_s14 = scalar_lea.hbm %s873_s2, 1024 }
  0x24   :  { %s40_s11 = sshll.u32 %s783_s10, 4  ;;  %p730_p2 = scmp.ne.s32.totalorder %s873_s2, %s729_s14  ;;  %s41_s11 = int_to_ptr.vmem [resolvable:$true] %s40_s11 }
  0x25   :  { %p733_p3 = scmp.lt.u32.totalorder %s729_s14, %s873_s2 }
  0x27   :  { %p735_p4 = pnand %p733_p3, %p730_p2 }
  0x29   :  { %738 = shalt.err (!%p735_p4)
}
  0x2a   :  { %s739_s20 = scalar_lea.vmem %s41_s11, 1024  ;;  %p744_p6 = scmp.lt.s32.totalorder %s41_s11, %s41_s11 }
  0x2b   :  { %p740_p5 = scmp.ne.s32.totalorder %s41_s11, %s739_s20  ;;  %p745_p7 = scmp.lt.s32.totalorder %s739_s20, %s739_s20 }
  0x2d   :  { %p746_p8 = por %p745_p7, %p744_p6 }
  0x2f   :  { %p747_p9 = pnand %p746_p8, %p740_p5 }
  0x31   :  { %750 = shalt.err (!%p747_p9)
}
  0x32   :  { %46 = dma.hbm_to_vmem [thread:$0]  %s873_s2, 1024, %s41_s11, [#allocation6], %s781_s24, %s781_s24, %s782_s25  }
  0x33   :  { %773 = dma.done.wait [#allocation3], 1024  }
  0x34   :  { %774 = vsyncadd [#allocation3], 4294966272 }
  0x35   :  { %775 = dma.done.wait [#allocation6], 2048  }
  0x36   :  { %776 = vsyncadd [#allocation6], 4294965248  ;;  %v629_v0 = vld [vmem:[#allocation5] sm:$0xff]   ;;  %v630_v1 = vld [vmem:[#allocation5 + $0x8] sm:$0xff]   ;;  %s784_s2 = smov [#allocation8]  }
  0x37   :  { %557 = vmatprep.subr.bf16.mxu0 %v629_v0  ;;  %v631_v2 = vld [vmem:[#allocation5 + $0x10] sm:$0xff]   ;;  %v632_v3 = vld [vmem:[#allocation5 + $0x18] sm:$0xff]   ;;  %v637_v4 = vld [vmem:[#allocation2] sm:$0xff]   ;;  %s488_s21 = sshll.u32 %s784_s2, 4  ;;  %s489_s21 = int_to_ptr.vmem [resolvable:$true] %s488_s21 }
  0x38   :  { %558 = vmatpush3.bf16.msra.mxu0 %v629_v0  ;;  %573 = vmatprep.mubr.bf16.mxu0 %v637_v4  ;;  %v633_v5 = vld [vmem:[#allocation5 + $0x20] sm:$0xff]   ;;  %v634_v6 = vld [vmem:[#allocation5 + $0x28] sm:$0xff]   ;;  %v635_v7 = vld [vmem:[#allocation5 + $0x30] sm:$0xff]   ;;  %s751_s22 = scalar_lea.vmem %s489_s21, 2048  ;;  %p756_p11 = scmp.lt.s32.totalorder %s489_s21, %s489_s21 }
  0x39   :  { %559 = vmatprep.subr.bf16.mxu0 %v630_v1  ;;  %v636_v8 = vld [vmem:[#allocation5 + $0x38] sm:$0xff]   ;;  %v638_v9 = vld [vmem:[#allocation2 + $0x8] sm:$0xff]   ;;  %v639_v10 = vld [vmem:[#allocation2 + $0x10] sm:$0xff]   ;;  %p752_p10 = scmp.ne.s32.totalorder %s489_s21, %s751_s22  ;;  %p757_p12 = scmp.lt.s32.totalorder %s751_s22, %s751_s22 }
  0x3a   :  { %v640_v11 = vld [vmem:[#allocation2 + $0x18] sm:$0xff]   ;;  %v641_v12 = vld [vmem:[#allocation2 + $0x20] sm:$0xff]   ;;  %v642_v13 = vld [vmem:[#allocation2 + $0x28] sm:$0xff]  }
  0x3b   :  { %v643_v14 = vld [vmem:[#allocation2 + $0x30] sm:$0xff]   ;;  %v644_v15 = vld [vmem:[#allocation2 + $0x38] sm:$0xff]   ;;  %v645_v16 = vld [vmem:[#allocation7] sm:$0xff]   ;;  %p758_p13 = por %p757_p12, %p756_p11 }
  0x3c   :  { %560 = vmatpush3.bf16.msra.mxu0 %v630_v1  ;;  %605 = vmatprep.mubr.bf16.mxu1 %v645_v16  ;;  %v646_v57 = vld [vmem:[#allocation7 + $0x8] sm:$0xff]   ;;  %v647_v58 = vld [vmem:[#allocation7 + $0x10] sm:$0xff]   ;;  %v648_v59 = vld [vmem:[#allocation7 + $0x18] sm:$0xff]  }
  0x3d   :  { %561 = vmatprep.subr.bf16.mxu0 %v631_v2  ;;  %v649_v60 = vld [vmem:[#allocation7 + $0x20] sm:$0xff]   ;;  %v650_v61 = vld [vmem:[#allocation7 + $0x28] sm:$0xff]   ;;  %v651_v62 = vld [vmem:[#allocation7 + $0x30] sm:$0xff]   ;;  %p759_p0 = pnand %p758_p13, %p752_p10 }
  0x3e   :  { %v652_v63 = vld [vmem:[#allocation7 + $0x38] sm:$0xff]  }
  0x40   :  { %562 = vmatpush3.bf16.msra.mxu0 %v631_v2 }
  0x41   :  { %563 = vmatprep.subr.bf16.mxu0 %v632_v3 }
  0x44   :  { %564 = vmatpush3.bf16.msra.mxu0 %v632_v3 }
  0x45   :  { %565 = vmatprep.subr.bf16.mxu0 %v633_v5 }
  0x48   :  { %566 = vmatpush3.bf16.msra.mxu0 %v633_v5 }
  0x49   :  { %567 = vmatprep.subr.bf16.mxu0 %v634_v6 }
  0x4c   :  { %568 = vmatpush3.bf16.msra.mxu0 %v634_v6 }
  0x4d   :  { %569 = vmatprep.subr.bf16.mxu0 %v635_v7 }
  0x50   :  { %570 = vmatpush3.bf16.msra.mxu0 %v635_v7 }
  0x51   :  { %571 = vmatprep.subr.bf16.mxu0 %v636_v8 }
  0x54   :  { %572 = vmatpush3.bf16.msra.mxu0 %v636_v8 }
  0x57   :  { %574 = vmatmul.mubr.bf16.vlgmr.msra.gmra.mrb[0].mxu0 %v638_v9 }
  0x58   :  { %577 = vmatprep.mubr.bf16.mxu0 %v639_v10 }
  0x5f   :  { %578 = vmatmul.mubr.bf16.gmra.mrb[4].mxu0 %v640_v11 }
  0x60   :  { %581 = vmatprep.mubr.bf16.mxu0 %v641_v12 }
  0x67   :  { %582 = vmatmul.mubr.bf16.gmra.mrb[8].mxu0 %v642_v13 }
  0x68   :  { %585 = vmatprep.mubr.bf16.mxu0 %v643_v14 }
  0x6f   :  { %586 = vmatmul.mubr.bf16.gmra.mrb[12].mxu0 %v644_v15 }
 0x12a   :  { %v575_v17 = vpop.f32.mrb[0].mxu0 }
 0x12b   :  { %653 = vtanh.f32 %v575_v17  ;;  %v219_v18 = vpop.f32.mrb[1].mxu0 }
 0x12c   :  { %655 = vtanh.f32 %v219_v18  ;;  %v576_v19 = vpop.f32.mrb[2].mxu0 }
 0x12d   :  { %657 = vtanh.f32 %v576_v19  ;;  %v222_v20 = vpop.f32.mrb[3].mxu0 }
 0x12e   :  { %659 = vtanh.f32 %v222_v20 }
 0x132   :  { %v579_v21 = vpop.f32.mrb[4].mxu0 }
 0x133   :  { %661 = vtanh.f32 %v579_v21  ;;  %v235_v22 = vpop.f32.mrb[5].mxu0 }
 0x134   :  { %663 = vtanh.f32 %v235_v22  ;;  %v580_v23 = vpop.f32.mrb[6].mxu0 }
 0x135   :  { %v654_v24 = vpop.eup %653  ;;  %665 = vtanh.f32 %v580_v23  ;;  %v238_v25 = vpop.f32.mrb[7].mxu0 }
 0x136   :  { %v656_v26 = vpop.eup %655  ;;  %667 = vtanh.f32 %v238_v25 }
 0x137   :  { %v658_v27 = vpop.eup %657 }
 0x138   :  { %v660_v28 = vpop.eup %659  ;;  %v315_v29 = vpack.c.bf16 %v658_v27, %v654_v24 }
 0x139   :  { %v314_v30 = vpack.c.bf16 %v660_v28, %v656_v26 }
 0x13a   :  { %v583_v31 = vpop.f32.mrb[8].mxu0 }
 0x13b   :  { %669 = vtanh.f32 %v583_v31  ;;  %v251_v32 = vpop.f32.mrb[9].mxu0  ;;  %589 = vmatprep.subr.bf16.mxu1 %v314_v30 }
 0x13c   :  { %671 = vtanh.f32 %v251_v32  ;;  %v584_v33 = vpop.f32.mrb[10].mxu0  ;;  %590 = vmatpush3.bf16.msra.mxu1 %v314_v30 }
 0x13d   :  { %v662_v34 = vpop.eup %661  ;;  %673 = vtanh.f32 %v584_v33  ;;  %v254_v35 = vpop.f32.mrb[11].mxu0  ;;  %591 = vmatprep.subr.bf16.mxu1 %v315_v29 }
 0x13e   :  { %v664_v36 = vpop.eup %663  ;;  %675 = vtanh.f32 %v254_v35 }
 0x13f   :  { %v666_v37 = vpop.eup %665 }
 0x140   :  { %v668_v38 = vpop.eup %667  ;;  %592 = vmatpush3.bf16.msra.mxu1 %v315_v29  ;;  %v317_v39 = vpack.c.bf16 %v666_v37, %v662_v34 }
 0x141   :  { %v316_v40 = vpack.c.bf16 %v668_v38, %v664_v36 }
 0x142   :  { %v587_v41 = vpop.f32.mrb[12].mxu0 }
 0x143   :  { %677 = vtanh.f32 %v587_v41  ;;  %v267_v42 = vpop.f32.mrb[13].mxu0  ;;  %593 = vmatprep.subr.bf16.mxu1 %v316_v40 }
 0x144   :  { %679 = vtanh.f32 %v267_v42  ;;  %v588_v43 = vpop.f32.mrb[14].mxu0  ;;  %594 = vmatpush3.bf16.msra.mxu1 %v316_v40 }
 0x145   :  { %v670_v44 = vpop.eup %669  ;;  %681 = vtanh.f32 %v588_v43  ;;  %v270_v45 = vpop.f32.mrb[15].mxu0  ;;  %595 = vmatprep.subr.bf16.mxu1 %v317_v39 }
 0x146   :  { %v672_v46 = vpop.eup %671  ;;  %683 = vtanh.f32 %v270_v45 }
 0x147   :  { %v674_v47 = vpop.eup %673 }
 0x148   :  { %v676_v48 = vpop.eup %675  ;;  %596 = vmatpush3.bf16.msra.mxu1 %v317_v39  ;;  %v319_v49 = vpack.c.bf16 %v674_v47, %v670_v44 }
 0x149   :  { %v318_v50 = vpack.c.bf16 %v676_v48, %v672_v46 }
 0x14b   :  { %597 = vmatprep.subr.bf16.mxu1 %v318_v50 }
 0x14c   :  { %598 = vmatpush3.bf16.msra.mxu1 %v318_v50 }
 0x14d   :  { %v678_v51 = vpop.eup %677  ;;  %599 = vmatprep.subr.bf16.mxu1 %v319_v49 }
 0x14e   :  { %v680_v52 = vpop.eup %679 }
 0x14f   :  { %v682_v53 = vpop.eup %681 }
 0x150   :  { %v684_v54 = vpop.eup %683  ;;  %600 = vmatpush3.bf16.msra.mxu1 %v319_v49  ;;  %v321_v55 = vpack.c.bf16 %v682_v53, %v678_v51 }
 0x151   :  { %v320_v56 = vpack.c.bf16 %v684_v54, %v680_v52 }
 0x153   :  { %601 = vmatprep.subr.bf16.mxu1 %v320_v56 }
 0x154   :  { %602 = vmatpush3.bf16.msra.mxu1 %v320_v56 }
 0x155   :  { %603 = vmatprep.subr.bf16.mxu1 %v321_v55 }
 0x158   :  { %604 = vmatpush3.bf16.msra.mxu1 %v321_v55 }
 0x15b   :  { %606 = vmatmul.mubr.bf16.vlgmr.msra.gmra.mrb[0].mxu1 %v646_v57 }
 0x15c   :  { %609 = vmatprep.mubr.bf16.mxu1 %v647_v58 }
 0x163   :  { %610 = vmatmul.mubr.bf16.gmra.mrb[4].mxu1 %v648_v59 }
 0x164   :  { %613 = vmatprep.mubr.bf16.mxu1 %v649_v60 }
 0x16b   :  { %614 = vmatmul.mubr.bf16.gmra.mrb[8].mxu1 %v650_v61 }
 0x16c   :  { %617 = vmatprep.mubr.bf16.mxu1 %v651_v62 }
 0x173   :  { %618 = vmatmul.mubr.bf16.gmra.mrb[12].mxu1 %v652_v63 }
 0x22e   :  { %v607_v0 = vpop.f32.mrb[0].mxu1 }
 0x22f   :  { %469 = vst [vmem:[#allocation8 + $0x10] sm:$0xff] %v607_v0  ;;  %v404_v1 = vpop.f32.mrb[1].mxu1 }
 0x230   :  { %467 = vst [vmem:[#allocation8] sm:$0xff] %v404_v1  ;;  %v608_v2 = vpop.f32.mrb[2].mxu1 }
 0x231   :  { %470 = vst [vmem:[#allocation8 + $0x18] sm:$0xff] %v608_v2  ;;  %v407_v3 = vpop.f32.mrb[3].mxu1 }
 0x232   :  { %468 = vst [vmem:[#allocation8 + $0x8] sm:$0xff] %v407_v3 }
 0x236   :  { %v611_v4 = vpop.f32.mrb[4].mxu1 }
 0x237   :  { %473 = vst [vmem:[#allocation8 + $0x30] sm:$0xff] %v611_v4  ;;  %v420_v5 = vpop.f32.mrb[5].mxu1 }
 0x238   :  { %471 = vst [vmem:[#allocation8 + $0x20] sm:$0xff] %v420_v5  ;;  %v612_v6 = vpop.f32.mrb[6].mxu1 }
 0x239   :  { %474 = vst [vmem:[#allocation8 + $0x38] sm:$0xff] %v612_v6  ;;  %v423_v7 = vpop.f32.mrb[7].mxu1 }
 0x23a   :  { %472 = vst [vmem:[#allocation8 + $0x28] sm:$0xff] %v423_v7 }
 0x23e   :  { %v615_v8 = vpop.f32.mrb[8].mxu1 }
 0x23f   :  { %477 = vst [vmem:[#allocation8 + $0x50] sm:$0xff] %v615_v8  ;;  %v436_v9 = vpop.f32.mrb[9].mxu1 }
 0x240   :  { %475 = vst [vmem:[#allocation8 + $0x40] sm:$0xff] %v436_v9  ;;  %v616_v10 = vpop.f32.mrb[10].mxu1 }
 0x241   :  { %478 = vst [vmem:[#allocation8 + $0x58] sm:$0xff] %v616_v10  ;;  %v439_v11 = vpop.f32.mrb[11].mxu1 }
 0x242   :  { %476 = vst [vmem:[#allocation8 + $0x48] sm:$0xff] %v439_v11 }
 0x246   :  { %v619_v12 = vpop.f32.mrb[12].mxu1 }
 0x247   :  { %481 = vst [vmem:[#allocation8 + $0x70] sm:$0xff] %v619_v12  ;;  %v452_v13 = vpop.f32.mrb[13].mxu1 }
 0x248   :  { %479 = vst [vmem:[#allocation8 + $0x60] sm:$0xff] %v452_v13  ;;  %v620_v14 = vpop.f32.mrb[14].mxu1 }
 0x249   :  { %482 = vst [vmem:[#allocation8 + $0x78] sm:$0xff] %v620_v14  ;;  %v455_v15 = vpop.f32.mrb[15].mxu1 }
 0x24a   :  { %480 = vst [vmem:[#allocation8 + $0x68] sm:$0xff] %v455_v15 }
 0x24b   :  { %762 = shalt.err (!%p759_p0)
}
 0x24c   :  { %s763_s25 = scalar_lea.hbm %s874_s3, 2048 }
 0x24d   :  { %p764_p1 = scmp.ne.s32.totalorder %s874_s3, %s763_s25  ;;  %p767_p2 = scmp.lt.u32.totalorder %s763_s25, %s874_s3 }
 0x24f   :  { %p769_p3 = pnand %p767_p2, %p764_p1 }
 0x251   :  { %772 = shalt.err (!%p769_p3)
}
 0x252   :  { %s785_s30 = smov 128   ;;  %s786_s4 = smov 8  }
 0x253   :  { %494 = dma.vmem_to_hbm [thread:$0]  %s489_s21, 2048, %s874_s3, [#allocation4], %s785_s30, %s785_s30, %s786_s4  }
 0x254   :  { %777 = dma.done.wait [#allocation4], 2048  }
 0x255   :  { %778 = vsyncadd [#allocation4], 4294965248 }
 0x256   :  { %498 = vsyncpa [#allocation3], 1 }
 0x257   :  { %499 = vsyncpa [#allocation6], 1 }
 0x258   :  { %500 = vsyncpa [#allocation4], 1 }

</bundles_post_ra>
